<compile_context>
chip_gen: v7x
topology: tpu7x:2x2x1
jax: 0.10.0
libtpu: 0.0.40
codegen_flags: <defaults>
</compile_context>

<pallas_src>
import jax
import jax.numpy as jnp
from jax.experimental import pallas as pl
from jax.experimental.pallas import tpu as pltpu


def _round_up(x, m):
    return (x + m - 1) // m * m


def _make_kernel(use_mxu):
    def kernel(x_ref, w_ref, b_ref, o_ref):
        # x_ref: (bn, C_in, tm)   input pixel tile (lane axis = pixels)
        # w_ref: (C_out, C_in)    full weight matrix (resident every step)
        # b_ref: (C_out, 1)       bias column (broadcast over lanes)
        # o_ref: (bn, C_out, tm)  lane-dense output tile
        w = w_ref[...]                        # (C_out, C_in)
        b = b_ref[...].astype(jnp.float32)    # (C_out, 1)
        bn = x_ref.shape[0]                   # static, small

        for bi in range(bn):
            x = x_ref[bi]                     # (C_in, tm)
            if use_mxu:
                acc = jax.lax.dot_general(
                    w, x,
                    dimension_numbers=(((1,), (0,)), ((), ())),
                    preferred_element_type=jnp.float32,
                )                             # (C_out, tm), f32 accumulate
            else:
                # VPU broadcast-FMA: unrolled over (small, static) C_in. Keeps
                # the whole tile in the VALU slots; no MXU push/pop on the
                # critical path. f32 math so bf16 inputs stay cheap on v5e.
                xf = x.astype(jnp.float32)
                wf = w.astype(jnp.float32)
                c_in = xf.shape[0]
                acc = wf[:, 0:1] * xf[0:1, :]
                for ci in range(1, c_in):
                    acc = acc + wf[:, ci:ci + 1] * xf[ci:ci + 1, :]

            o_ref[bi] = (acc + b).astype(o_ref.dtype)

    return kernel


@jax.jit
def outconv_forward(x_nchw, weight, bias):
    """1x1 Conv2d forward.

    x_nchw: (N, C_in, H, W)
    weight: (C_out, C_in, 1, 1)   -- PyTorch Conv2d weight layout
    bias:   (C_out,)
    returns (N, C_out, H, W)
    """
    N, C_in, H, W = x_nchw.shape
    C_out = weight.shape[0]
    HW = H * W
    dtype_bytes = jnp.dtype(x_nchw.dtype).itemsize

    # --- pick the pixel-tile size (lane axis) -------------------------------
    # Double-buffered input + output tiles must fit comfortably inside the
    # smallest default scoped-VMEM across chip generations; an 8 MiB budget
    # leaves ample headroom even on v7x (64 MiB physical / 32 MiB scoped).
    VMEM_BUDGET = 8 * 1024 * 1024
    per_px_bytes = 2 * (C_in + C_out) * max(dtype_bytes, 4)  # double-buffered
    tm_cap = max(128, VMEM_BUDGET // per_px_bytes)
    tm = min(2048, tm_cap, _round_up(HW, 128))
    tm = max(128, (tm // 128) * 128)

    n_tiles = pl.cdiv(HW, tm)
    HW_pad = n_tiles * tm

    # --- batch blocking for small images -------------------------------------
    # If a whole (padded) image fits in one pixel tile, process several batch
    # items per grid step to amortize per-step overhead. bn must divide N so
    # every block is full.
    bn = 1
    if n_tiles == 1 and N > 1:
        budget_bn = max(1, tm_cap // HW_pad)   # images that fit the VMEM budget
        want = min(N, budget_bn, 8)
        for d in range(want, 0, -1):
            if N % d == 0:
                bn = d
                break

    # --- wrapper glue: free reshapes only (no transposes) -------------------
    x3 = x_nchw.reshape(N, C_in, HW)
    if HW_pad != HW:
        # Pad the pixel axis so every tile is full; padded columns are sliced
        # off at the end.
        x3 = jnp.pad(x3, ((0, 0), (0, 0), (0, HW_pad - HW)))

    w_mat = weight.reshape(C_out, C_in)
    b_col = bias.reshape(C_out, 1)

    # Tiny channel counts -> VPU FMA path; real OutConv sizes -> MXU.
    use_mxu = (C_in * C_out) > 256
    kernel = _make_kernel(use_mxu)

    flops = 2 * N * HW * C_in * C_out
    bytes_accessed = dtype_bytes * (
        N * HW * C_in + N * HW * C_out + C_in * C_out + C_out)

    out3 = pl.pallas_call(
        kernel,
        out_shape=jax.ShapeDtypeStruct((N, C_out, HW_pad), x_nchw.dtype),
        grid_spec=pltpu.PrefetchScalarGridSpec(
            num_scalar_prefetch=0,
            grid=(N // bn, n_tiles),
            in_specs=[
                pl.BlockSpec((bn, C_in, tm), lambda n, i: (n, 0, i)),   # x tile
                pl.BlockSpec((C_out, C_in), lambda n, i: (0, 0)),       # weights
                pl.BlockSpec((C_out, 1), lambda n, i: (0, 0)),          # bias
            ],
            out_specs=pl.BlockSpec((bn, C_out, tm), lambda n, i: (n, 0, i)),
        ),
        compiler_params=pltpu.CompilerParams(
            dimension_semantics=("parallel", "parallel"),
        ),
        cost_estimate=pl.CostEstimate(
            flops=flops, transcendentals=0, bytes_accessed=bytes_accessed),
    )(x3, w_mat, b_col)

    if HW_pad != HW:
        out3 = out3[:, :, :HW]
    return out3.reshape(N, C_out, H, W)


if __name__ == "__main__":
    key = jax.random.PRNGKey(0)
    k_x, k_w, k_b = jax.random.split(key, 3)

    N, C_in, C_out, Hs, Ws = 2, 4, 8, 16, 16

    x = jax.random.normal(k_x, (N, C_in, Hs, Ws), dtype=jnp.float32)
    # Conv2d parameter shapes: weight (C_out, C_in, 1, 1), bias (C_out,)
    bound = 1.0 / (C_in ** 0.5)
    weight = jax.random.uniform(k_w, (C_out, C_in, 1, 1),
                                minval=-bound, maxval=bound, dtype=jnp.float32)
    bias = jax.random.uniform(k_b, (C_out,),
                              minval=-bound, maxval=bound, dtype=jnp.float32)

    out = outconv_forward(x, weight, bias)
    out = jax.block_until_ready(out)

    # Pure-JAX reference (1x1 conv == channel matmul)
    ref = jnp.einsum("nchw,oc->nohw", x, weight.reshape(C_out, C_in)) \
        + bias.reshape(1, C_out, 1, 1)
    assert out.shape == (N, C_out, Hs, Ws)
    assert jnp.allclose(out, ref, atol=1e-5, rtol=1e-5)

    print("KERNEL_OK")
</pallas_src>

<mosaic_0001>
module attributes {stable_mosaic.version = 11 : i64} {
  func.func @kernel(%arg0: i32, %arg1: i32, %arg2: memref<2x4x256xf32, #tpu.memory_space<vmem>>, %arg3: memref<8x4xf32, #tpu.memory_space<vmem>>, %arg4: memref<8x1xf32, #tpu.memory_space<vmem>>, %arg5: memref<2x8x256xf32, #tpu.memory_space<vmem>>) attributes {dimension_semantics = [#tpu.dimension_semantics<parallel>, #tpu.dimension_semantics<parallel>], iteration_bounds = array<i64: 1, 1>, scalar_prefetch = 0 : i64, scratch_operands = 0 : i64, tpu.core_type = #tpu.core_type<tc>, window_params = [{transform_indices = @transform_0, window_bounds = array<i64: 2, 4, 256>}, {pipeline_mode = #tpu.pipeline_mode<synchronous>, transform_indices = @transform_1, window_bounds = array<i64: 8, 4>}, {pipeline_mode = #tpu.pipeline_mode<synchronous>, transform_indices = @transform_2, window_bounds = array<i64: 8, 1>}, {transform_indices = @transform_3, window_bounds = array<i64: 2, 8, 256>}]} {
    %c0 = arith.constant 0 : index
    %c0_0 = arith.constant 0 : index
    %0 = vector.load %arg3[%c0, %c0_0] : memref<8x4xf32, #tpu.memory_space<vmem>>, vector<8x4xf32>
    %c0_1 = arith.constant 0 : index
    %c0_2 = arith.constant 0 : index
    %1 = vector.load %arg4[%c0_1, %c0_2] : memref<8x1xf32, #tpu.memory_space<vmem>>, vector<8x1xf32>
    %c0_3 = arith.constant 0 : index
    %c0_4 = arith.constant 0 : index
    %c0_5 = arith.constant 0 : index
    %2 = vector.load %arg2[%c0_3, %c0_4, %c0_5] : memref<2x4x256xf32, #tpu.memory_space<vmem>>, vector<1x4x256xf32>
    %3 = vector.shape_cast %2 : vector<1x4x256xf32> to vector<4x256xf32>
    %4 = vector.extract_strided_slice %0 {offsets = [0, 0], sizes = [8, 1], strides = [1, 1]} : vector<8x4xf32> to vector<8x1xf32>
    %5 = vector.extract_strided_slice %3 {offsets = [0, 0], sizes = [1, 256], strides = [1, 1]} : vector<4x256xf32> to vector<1x256xf32>
    %6 = vector.broadcast %4 : vector<8x1xf32> to vector<8x256xf32>
    %7 = vector.broadcast %5 : vector<1x256xf32> to vector<8x256xf32>
    %8 = arith.mulf %6, %7 : vector<8x256xf32>
    %9 = vector.extract_strided_slice %0 {offsets = [0, 1], sizes = [8, 1], strides = [1, 1]} : vector<8x4xf32> to vector<8x1xf32>
    %10 = vector.extract_strided_slice %3 {offsets = [1, 0], sizes = [1, 256], strides = [1, 1]} : vector<4x256xf32> to vector<1x256xf32>
    %11 = vector.broadcast %9 : vector<8x1xf32> to vector<8x256xf32>
    %12 = vector.broadcast %10 : vector<1x256xf32> to vector<8x256xf32>
    %13 = arith.mulf %11, %12 : vector<8x256xf32>
    %14 = arith.addf %8, %13 : vector<8x256xf32>
    %15 = vector.extract_strided_slice %0 {offsets = [0, 2], sizes = [8, 1], strides = [1, 1]} : vector<8x4xf32> to vector<8x1xf32>
    %16 = vector.extract_strided_slice %3 {offsets = [2, 0], sizes = [1, 256], strides = [1, 1]} : vector<4x256xf32> to vector<1x256xf32>
    %17 = vector.broadcast %15 : vector<8x1xf32> to vector<8x256xf32>
    %18 = vector.broadcast %16 : vector<1x256xf32> to vector<8x256xf32>
    %19 = arith.mulf %17, %18 : vector<8x256xf32>
    %20 = arith.addf %14, %19 : vector<8x256xf32>
    %21 = vector.extract_strided_slice %0 {offsets = [0, 3], sizes = [8, 1], strides = [1, 1]} : vector<8x4xf32> to vector<8x1xf32>
    %22 = vector.extract_strided_slice %3 {offsets = [3, 0], sizes = [1, 256], strides = [1, 1]} : vector<4x256xf32> to vector<1x256xf32>
    %23 = vector.broadcast %21 : vector<8x1xf32> to vector<8x256xf32>
    %24 = vector.broadcast %22 : vector<1x256xf32> to vector<8x256xf32>
    %25 = arith.mulf %23, %24 : vector<8x256xf32>
    %26 = arith.addf %20, %25 : vector<8x256xf32>
    %27 = vector.broadcast %1 : vector<8x1xf32> to vector<8x256xf32>
    %28 = arith.addf %26, %27 : vector<8x256xf32>
    %c0_6 = arith.constant 0 : index
    %c0_7 = arith.constant 0 : index
    %c0_8 = arith.constant 0 : index
    %29 = vector.load %arg5[%c0_6, %c0_7, %c0_8] : memref<2x8x256xf32, #tpu.memory_space<vmem>>, vector<1x8x256xf32>
    %30 = vector.shape_cast %29 : vector<1x8x256xf32> to vector<8x256xf32>
    %31 = vector.shape_cast %28 : vector<8x256xf32> to vector<1x8x256xf32>
    tpu.vector_store %arg5[%c0_6, %c0_7, %c0_8], %31 {strides = array<i32>} : memref<2x8x256xf32, #tpu.memory_space<vmem>>, vector<1x8x256xf32>,
    %c1 = arith.constant 1 : index
    %c0_9 = arith.constant 0 : index
    %c0_10 = arith.constant 0 : index
    %32 = vector.load %arg2[%c1, %c0_9, %c0_10] : memref<2x4x256xf32, #tpu.memory_space<vmem>>, vector<1x4x256xf32>
    %33 = vector.shape_cast %32 : vector<1x4x256xf32> to vector<4x256xf32>
    %34 = vector.extract_strided_slice %0 {offsets = [0, 0], sizes = [8, 1], strides = [1, 1]} : vector<8x4xf32> to vector<8x1xf32>
    %35 = vector.extract_strided_slice %33 {offsets = [0, 0], sizes = [1, 256], strides = [1, 1]} : vector<4x256xf32> to vector<1x256xf32>
    %36 = vector.broadcast %34 : vector<8x1xf32> to vector<8x256xf32>
    %37 = vector.broadcast %35 : vector<1x256xf32> to vector<8x256xf32>
    %38 = arith.mulf %36, %37 : vector<8x256xf32>
    %39 = vector.extract_strided_slice %0 {offsets = [0, 1], sizes = [8, 1], strides = [1, 1]} : vector<8x4xf32> to vector<8x1xf32>
    %40 = vector.extract_strided_slice %33 {offsets = [1, 0], sizes = [1, 256], strides = [1, 1]} : vector<4x256xf32> to vector<1x256xf32>
    %41 = vector.broadcast %39 : vector<8x1xf32> to vector<8x256xf32>
    %42 = vector.broadcast %40 : vector<1x256xf32> to vector<8x256xf32>
    %43 = arith.mulf %41, %42 : vector<8x256xf32>
    %44 = arith.addf %38, %43 : vector<8x256xf32>
    %45 = vector.extract_strided_slice %0 {offsets = [0, 2], sizes = [8, 1], strides = [1, 1]} : vector<8x4xf32> to vector<8x1xf32>
    %46 = vector.extract_strided_slice %33 {offsets = [2, 0], sizes = [1, 256], strides = [1, 1]} : vector<4x256xf32> to vector<1x256xf32>
    %47 = vector.broadcast %45 : vector<8x1xf32> to vector<8x256xf32>
    %48 = vector.broadcast %46 : vector<1x256xf32> to vector<8x256xf32>
    %49 = arith.mulf %47, %48 : vector<8x256xf32>
    %50 = arith.addf %44, %49 : vector<8x256xf32>
    %51 = vector.extract_strided_slice %0 {offsets = [0, 3], sizes = [8, 1], strides = [1, 1]} : vector<8x4xf32> to vector<8x1xf32>
    %52 = vector.extract_strided_slice %33 {offsets = [3, 0], sizes = [1, 256], strides = [1, 1]} : vector<4x256xf32> to vector<1x256xf32>
    %53 = vector.broadcast %51 : vector<8x1xf32> to vector<8x256xf32>
    %54 = vector.broadcast %52 : vector<1x256xf32> to vector<8x256xf32>
    %55 = arith.mulf %53, %54 : vector<8x256xf32>
    %56 = arith.addf %50, %55 : vector<8x256xf32>
    %57 = vector.broadcast %1 : vector<8x1xf32> to vector<8x256xf32>
    %58 = arith.addf %56, %57 : vector<8x256xf32>
    %c1_11 = arith.constant 1 : index
    %c0_12 = arith.constant 0 : index
    %c0_13 = arith.constant 0 : index
    %59 = vector.load %arg5[%c1_11, %c0_12, %c0_13] : memref<2x8x256xf32, #tpu.memory_space<vmem>>, vector<1x8x256xf32>
    %60 = vector.shape_cast %59 : vector<1x8x256xf32> to vector<8x256xf32>
    %61 = vector.shape_cast %58 : vector<8x256xf32> to vector<1x8x256xf32>
    tpu.vector_store %arg5[%c1_11, %c0_12, %c0_13], %61 {strides = array<i32>} : memref<2x8x256xf32, #tpu.memory_space<vmem>>, vector<1x8x256xf32>,
    return
  }
  func.func @transform_0(%arg0: i32, %arg1: i32) -> (i32, i32, i32) {
    %c0_i32 = arith.constant 0 : i32
    %c0_i32_0 = arith.constant 0 : i32
    return %arg0, %c0_i32, %arg1 : i32, i32, i32
  }
  func.func @transform_1(%arg0: i32, %arg1: i32) -> (i32, i32) {
    %c0_i32 = arith.constant 0 : i32
    %c0_i32_0 = arith.constant 0 : i32
    %c0_i32_1 = arith.constant 0 : i32
    return %c0_i32, %c0_i32_0 : i32, i32
  }
  func.func @transform_2(%arg0: i32, %arg1: i32) -> (i32, i32) {
    %c0_i32 = arith.constant 0 : i32
    %c0_i32_0 = arith.constant 0 : i32
    %c0_i32_1 = arith.constant 0 : i32
    return %c0_i32, %c0_i32_0 : i32, i32
  }
  func.func @transform_3(%arg0: i32, %arg1: i32) -> (i32, i32, i32) {
    %c0_i32 = arith.constant 0 : i32
    %c0_i32_0 = arith.constant 0 : i32
    return %arg0, %c0_i32, %arg1 : i32, i32, i32
  }
}

</mosaic_0001>

<bundles_post_ra>
// kernel: outconv_forward.1
= control target key start
LH: loop header
LB: loop body
LE: loop exit
PB: predicated region body
PF: predicated region fallthrough
CT: control target
= control target key end

     0   :  { %v241_v0 = vmov 0   ;;  %v242_v2 = vmov 2   ;;  %v243_v3 = vmov 1   ;;  %v244_v4 = vmov 3   ;;  %s289_s1 = inlined_call_operand.vmem [shape: f32[8,4], index: 1, kind: input, shape index: {}]   ;;  %s290_s2 = inlined_call_operand.vmem [shape: f32[8,1], index: 2, kind: input, shape index: {}]   ;;  %s291_s0 = inlined_call_operand.vmem [shape: f32[2,4,256], index: 0, kind: input, shape index: {}]   ;;  %s292_s3 = inlined_call_operand.vmem [shape: f32[2,8,256], index: 3, kind: output, shape index: {}]  }
   0x1   :  { %235 = vset.pattern.permute.xlu0 %v241_v0  ;;  %v14_v1 = vld [vmem:[%s289_s1] sm:$0xff]  ;;  %237 = vset.pattern.permute.xlu1 %v242_v2  ;;  %v23_v6 = vlaneseq  ;;  %v228_v11 = vld [vmem:[%s291_s0 + $0x8] sm:$0xff] }
   0x2   :  { %19 = vperm.xlu0 %235, %v14_v1   ;;  %70 = vperm.xlu1 %237, %v14_v1   ;;  %v15_v5 = vld [vmem:[%s290_s2] sm:$0xff] }
   0x3   :  { %v24_v7 = vshrl.u32 %v23_v6, 7  ;;  %v16_v10 = vld [vmem:[%s291_s0] sm:$0xff] }
   0x5   :  { %v25_v8 = vsub.s32 0, %v24_v7  ;;  %v29_v9 = vsub.s32 4, %v24_v7  ;;  %v75_v12 = vsub.s32 2, %v24_v7  ;;  %v79_v13 = vsub.s32 6, %v24_v7 }
   0x6   :  { %236 = vset.pattern.permute.xlu0 %v243_v3  ;;  %238 = vset.pattern.permute.xlu1 %v244_v4  ;;  %v49_v14 = vsub.s32 1, %v24_v7  ;;  %v53_v15 = vsub.s32 5, %v24_v7  ;;  %v101_v16 = vsub.s32 3, %v24_v7  ;;  %v105_v17 = vsub.s32 7, %v24_v7 }
   0x7   :  { %44 = vperm.xlu0 %236, %v14_v1   ;;  %96 = vperm.xlu1 %238, %v14_v1   ;;  %v26_v18 = vrot.slane %v16_v10, %v25_v8  ;;  %v30_v19 = vrot.slane %v16_v10, %v29_v9  ;;  %v136_v20 = vrot.slane %v228_v11, %v25_v8 }
   0x8   :  { %v140_v21 = vrot.slane %v228_v11, %v29_v9  ;;  %v76_v22 = vrot.slane %v16_v10, %v75_v12  ;;  %v80_v23 = vrot.slane %v16_v10, %v79_v13  ;;  %v178_v24 = vrot.slane %v228_v11, %v75_v12 }
   0x9   :  { %v182_v25 = vrot.slane %v228_v11, %v79_v13  ;;  %v50_v26 = vrot.slane %v16_v10, %v49_v14  ;;  %v54_v27 = vrot.slane %v16_v10, %v53_v15  ;;  %v156_v28 = vrot.slane %v228_v11, %v49_v14 }
   0xa   :  { %v160_v29 = vrot.slane %v228_v11, %v53_v15  ;;  %v102_v30 = vrot.slane %v16_v10, %v101_v16  ;;  %v106_v31 = vrot.slane %v16_v10, %v105_v17  ;;  %v200_v32 = vrot.slane %v228_v11, %v101_v16 }
   0xb   :  { %239 = vset.pattern.permute.xlu1 %v241_v0  ;;  %240 = vset.pattern.permute.xlu0 %v241_v0  ;;  %v204_v33 = vrot.slane %v228_v11, %v105_v17  ;;  %v36_v35 = vrot.slane %v26_v18, %v25_v8  ;;  %v40_v36 = vrot.slane %v30_v19, %v25_v8 }
   0xc   :  { %123 = vperm.xlu1 %239, %v15_v5   ;;  %v146_v37 = vrot.slane %v136_v20, %v25_v8  ;;  %v150_v38 = vrot.slane %v140_v21, %v25_v8  ;;  %v86_v40 = vrot.slane %v76_v22, %v75_v12  ;;  %v90_v41 = vrot.slane %v80_v23, %v75_v12 }
   0xd   :  { %v188_v42 = vrot.slane %v178_v24, %v75_v12  ;;  %v192_v43 = vrot.slane %v182_v25, %v75_v12  ;;  %v60_v44 = vrot.slane %v50_v26, %v49_v14  ;;  %v64_v45 = vrot.slane %v54_v27, %v49_v14 }
   0xe   :  { %v166_v46 = vrot.slane %v156_v28, %v49_v14  ;;  %v170_v47 = vrot.slane %v160_v29, %v49_v14  ;;  %v112_v48 = vrot.slane %v102_v30, %v101_v16  ;;  %v116_v49 = vrot.slane %v106_v31, %v101_v16 }
   0xf   :  { %v210_v50 = vrot.slane %v200_v32, %v101_v16  ;;  %v214_v51 = vrot.slane %v204_v33, %v101_v16 }
  0x81   :  { %v20_v34 = vpop.permute.xlu0 %19  ;;  %v71_v39 = vpop.permute.xlu1 %70 }
  0x82   :  { %v41_v52 = vmul.f32 %v36_v35, %v20_v34  ;;  %v42_v53 = vmul.f32 %v40_v36, %v20_v34  ;;  %v151_v54 = vmul.f32 %v146_v37, %v20_v34  ;;  %v152_v55 = vmul.f32 %v150_v38, %v20_v34 }
  0x83   :  { %v91_v56 = vmul.f32 %v86_v40, %v71_v39  ;;  %v92_v57 = vmul.f32 %v90_v41, %v71_v39  ;;  %v193_v58 = vmul.f32 %v188_v42, %v71_v39  ;;  %v194_v59 = vmul.f32 %v192_v43, %v71_v39 }
  0x86   :  { %v45_v60 = vpop.permute.xlu0 %44  ;;  %v97_v61 = vpop.permute.xlu1 %96 }
  0x87   :  { %v65_v62 = vmul.f32 %v60_v44, %v45_v60  ;;  %v66_v63 = vmul.f32 %v64_v45, %v45_v60  ;;  %v171_v0 = vmul.f32 %v166_v46, %v45_v60  ;;  %v172_v1 = vmul.f32 %v170_v47, %v45_v60 }
  0x88   :  { %v117_v2 = vmul.f32 %v112_v48, %v97_v61  ;;  %v118_v3 = vmul.f32 %v116_v49, %v97_v61  ;;  %v215_v4 = vmul.f32 %v210_v50, %v97_v61  ;;  %v216_v5 = vmul.f32 %v214_v51, %v97_v61 }
  0x89   :  { %v67_v6 = vadd.f32 %v65_v62, %v41_v52  ;;  %v68_v7 = vadd.f32 %v66_v63, %v42_v53  ;;  %v173_v8 = vadd.f32 %v171_v0, %v151_v54  ;;  %v174_v9 = vadd.f32 %v172_v1, %v152_v55 }
  0x8b   :  { %v93_v10 = vadd.f32 %v91_v56, %v67_v6  ;;  %v94_v11 = vadd.f32 %v92_v57, %v68_v7  ;;  %v195_v12 = vadd.f32 %v193_v58, %v173_v8  ;;  %v196_v13 = vadd.f32 %v194_v59, %v174_v9  ;;  %v124_v14 = vpop.permute.xlu1 %123 }
  0x8d   :  { %v119_v15 = vadd.f32 %v117_v2, %v93_v10  ;;  %v120_v16 = vadd.f32 %v118_v3, %v94_v11  ;;  %v217_v17 = vadd.f32 %v215_v4, %v195_v12  ;;  %v218_v18 = vadd.f32 %v216_v5, %v196_v13 }
  0x8f   :  { %v126_v19 = vadd.f32 %v124_v14, %v119_v15  ;;  %v127_v20 = vadd.f32 %v124_v14, %v120_v16  ;;  %v219_v21 = vadd.f32 %v217_v17, %v124_v14  ;;  %v220_v22 = vadd.f32 %v218_v18, %v124_v14 }
  0x91   :  { %128 = vst [vmem:[%s292_s3] sm:$0xff] %v126_v19  ;;  %129 = vst [vmem:[%s292_s3 + $0x8] sm:$0xff] %v127_v20 }
  0x92   :  { %229 = vst [vmem:[%s292_s3 + $0x10] sm:$0xff] %v219_v21  ;;  %230 = vst [vmem:[%s292_s3 + $0x18] sm:$0xff] %v220_v22 }

</bundles_post_ra>
